<compile_context>
chip_gen: v7x
topology: tpu7x:2x2x1
jax: 0.10.0
libtpu: 0.0.40
codegen_flags: <defaults>
</compile_context>

<pallas_src>
import functools

import jax
import jax.numpy as jnp
from jax.experimental import pallas as pl
from jax.experimental.pallas import tpu as pltpu


def _round_up(x, m):
    return ((x + m - 1) // m) * m


def _vmem_limit_bytes():
    # Per-generation scoped-VMEM budget: ~half of physical VMEM
    # (v5e/v6e: 128 MiB -> 64 MiB, v7x: 64 MiB -> 32 MiB), floor at 32 MiB.
    try:
        cap = int(pltpu.get_tpu_info().vmem_capacity_bytes)
    except Exception:
        cap = 64 * 1024 * 1024
    return max(32 * 1024 * 1024, min(64 * 1024 * 1024, cap // 2))


def _pick_tile(dim, targets, align):
    """Largest target tile <= dim, else dim rounded up to `align` (padded)."""
    for t in targets:
        if dim >= t:
            return t
    return _round_up(dim, align)


# ---------------------------------------------------------------------------
# Tiled projection matmul kernels (f32 accumulator, K-reduction grid axis)
# ---------------------------------------------------------------------------
def _matmul_accum(x_ref, w_ref, acc_ref):
    @pl.when(pl.program_id(2) == 0)
    def _():
        acc_ref[...] = jnp.zeros_like(acc_ref)

    acc_ref[...] += jnp.dot(
        x_ref[...], w_ref[...], preferred_element_type=jnp.float32
    )


def _matmul_kernel(x_ref, w_ref, o_ref, acc_ref):
    _matmul_accum(x_ref, w_ref, acc_ref)

    @pl.when(pl.program_id(2) == pl.num_programs(2) - 1)
    def _():
        o_ref[...] = acc_ref[...].astype(o_ref.dtype)


def _matmul_bias_kernel(x_ref, w_ref, b_ref, o_ref, acc_ref):
    _matmul_accum(x_ref, w_ref, acc_ref)

    @pl.when(pl.program_id(2) == pl.num_programs(2) - 1)
    def _():
        o_ref[...] = (acc_ref[...] + b_ref[...]).astype(o_ref.dtype)


def pallas_matmul(x, w, b=None, out_dtype=None):
    """y = x @ w (+ b), tiled (tm, tn, tk) with an f32 VMEM accumulator.

    Inputs are zero-padded up to the tile grid (instead of falling back to one
    giant un-pipelined block) so arbitrary M = B*N (e.g. ViT N=197) still gets
    proper DMA/compute overlap.
    """
    M, K = x.shape
    K2, N = w.shape
    assert K == K2
    out_dtype = out_dtype or x.dtype

    tm = _pick_tile(M, (256, 128), 8)
    tn = _pick_tile(N, (256, 128), 128)
    tk = _pick_tile(K, (512, 256, 128), 128)
    Mp, Np, Kp = _round_up(M, tm), _round_up(N, tn), _round_up(K, tk)

    if (Mp, Kp) != (M, K):
        x = jnp.pad(x, ((0, Mp - M), (0, Kp - K)))
    if (Kp, Np) != (K, N):
        w = jnp.pad(w, ((0, Kp - K), (0, Np - N)))

    grid = (Mp // tm, Np // tn, Kp // tk)
    in_specs = [
        pl.BlockSpec((tm, tk), lambda i, j, k: (i, k)),
        pl.BlockSpec((tk, tn), lambda i, j, k: (k, j)),
    ]
    operands = [x, w]
    if b is None:
        kernel = _matmul_kernel
    else:
        kernel = _matmul_bias_kernel
        bias = jnp.pad(b.astype(jnp.float32), (0, Np - N)).reshape(1, Np)
        in_specs.append(pl.BlockSpec((1, tn), lambda i, j, k: (0, j)))
        operands.append(bias)

    bytes_accessed = int(
        x.size * x.dtype.itemsize
        + w.size * w.dtype.itemsize
        + Mp * Np * jnp.dtype(out_dtype).itemsize
    )
    out = pl.pallas_call(
        kernel,
        out_shape=jax.ShapeDtypeStruct((Mp, Np), out_dtype),
        grid=grid,
        in_specs=in_specs,
        out_specs=pl.BlockSpec((tm, tn), lambda i, j, k: (i, j)),
        scratch_shapes=[pltpu.VMEM((tm, tn), jnp.float32)],
        compiler_params=pltpu.CompilerParams(
            dimension_semantics=("parallel", "parallel", "arbitrary"),
            vmem_limit_bytes=_vmem_limit_bytes(),
        ),
        cost_estimate=pl.CostEstimate(
            flops=int(2 * Mp * Np * Kp),
            transcendentals=0,
            bytes_accessed=bytes_accessed,
        ),
    )(*operands)

    if (Mp, Np) != (M, N):
        out = out[:M, :N]
    return out


# ---------------------------------------------------------------------------
# Flash-style multi-head attention: grid = (B, H, q_tiles, kv_tiles)
# Online softmax across the kv axis; per-(batch, head, q-tile) accumulators
# live in VMEM scratch.  Full (N, N) score matrices never materialize.
# ---------------------------------------------------------------------------
def _flash_attn_kernel(q_ref, k_ref, v_ref, o_ref, m_sc, l_sc, acc_sc, *,
                       scale, kv_len, block_kv, need_mask):
    ki = pl.program_id(3)

    @pl.when(ki == 0)
    def _():
        m_sc[...] = jnp.full_like(m_sc, -jnp.inf)
        l_sc[...] = jnp.zeros_like(l_sc)
        acc_sc[...] = jnp.zeros_like(acc_sc)

    # Scale q once per tile (tq*D elements) instead of the (tq, tkv) scores.
    q = q_ref[...] * jnp.asarray(scale, dtype=q_ref.dtype)

    # scores = q @ k^T, contracting the head dim (no transpose), f32 accum.
    s = jax.lax.dot_general(
        q, k_ref[...], (((1,), (1,)), ((), ())),
        preferred_element_type=jnp.float32,
    )  # (tq, tkv) f32

    if need_mask:  # static: only emitted when the sequence was padded
        kpos = ki * block_kv + jax.lax.broadcasted_iota(jnp.int32, s.shape, 1)
        s = jnp.where(kpos < kv_len, s, -1e30)

    # Online softmax update (statistics kept in f32).
    m_prev = m_sc[...]
    m_new = jnp.maximum(m_prev, jnp.max(s, axis=-1, keepdims=True))
    alpha = jnp.exp(m_prev - m_new)
    p = jnp.exp(s - m_new)  # (tq, tkv) f32, unnormalized
    l_sc[...] = alpha * l_sc[...] + jnp.sum(p, axis=-1, keepdims=True)
    acc_sc[...] = alpha * acc_sc[...] + jnp.dot(
        p.astype(v_ref.dtype), v_ref[...], preferred_element_type=jnp.float32
    )
    m_sc[...] = m_new

    @pl.when(ki == pl.num_programs(3) - 1)
    def _():
        # Normalize AFTER the PV matmul: O(tq*D) VPU work, not O(tq*tkv).
        inv = pl.reciprocal(l_sc[...], approx=True)
        o_ref[...] = (acc_sc[...] * inv).astype(o_ref.dtype)


def pallas_flash_attention(q, k, v, scale):
    """q, k, v: (B, H, N, D)  ->  attention output (B, H, N, D)."""
    B, H, N, D = q.shape
    T = _pick_tile(N, (256, 128), 8)     # q/kv tile length
    Np = _round_up(N, T)
    if Np != N:
        pad = ((0, 0), (0, 0), (0, Np - N), (0, 0))
        q, k, v = (jnp.pad(a, pad) for a in (q, k, v))

    kernel = functools.partial(
        _flash_attn_kernel, scale=scale, kv_len=N, block_kv=T,
        need_mask=(Np != N))

    itemsize = jnp.dtype(q.dtype).itemsize
    out = pl.pallas_call(
        kernel,
        out_shape=jax.ShapeDtypeStruct((B, H, Np, D), q.dtype),
        grid=(B, H, Np // T, Np // T),
        in_specs=[
            pl.BlockSpec((None, None, T, D), lambda b, h, qi, ki: (b, h, qi, 0)),
            pl.BlockSpec((None, None, T, D), lambda b, h, qi, ki: (b, h, ki, 0)),
            pl.BlockSpec((None, None, T, D), lambda b, h, qi, ki: (b, h, ki, 0)),
        ],
        out_specs=pl.BlockSpec(
            (None, None, T, D), lambda b, h, qi, ki: (b, h, qi, 0)),
        scratch_shapes=[
            pltpu.VMEM((T, 1), jnp.float32),   # running max
            pltpu.VMEM((T, 1), jnp.float32),   # running softmax denominator
            pltpu.VMEM((T, D), jnp.float32),   # unnormalized output accumulator
        ],
        compiler_params=pltpu.CompilerParams(
            dimension_semantics=("parallel", "parallel", "parallel", "arbitrary"),
            vmem_limit_bytes=_vmem_limit_bytes(),
        ),
        cost_estimate=pl.CostEstimate(
            flops=int(4 * B * H * Np * Np * D),
            transcendentals=int(B * H * Np * Np),
            bytes_accessed=int(4 * B * H * Np * D * itemsize),
        ),
    )(q, k, v)

    if Np != N:
        out = out[:, :, :N, :]
    return out


# ---------------------------------------------------------------------------
# Full module forward (eval mode; dropout layers are identity)
# ---------------------------------------------------------------------------
def attention_forward(x, params, num_heads, compute_dtype=None):
    """compute_dtype=jnp.bfloat16 casts MXU operands to bf16 (f32 accumulation,
    f32 softmax statistics); None keeps the input dtype."""
    B, N, C = x.shape
    H = num_heads
    D = C // H
    scale = D ** (-0.5)
    cdt = jnp.dtype(compute_dtype) if compute_dtype is not None else x.dtype

    # 1) QKV projection (no bias: qkv_bias=False is the module default).
    x2d = x.reshape(B * N, C).astype(cdt)
    qkv2d = pallas_matmul(x2d, params["w_qkv"].astype(cdt), out_dtype=cdt)

    # 2) Layout plumbing (one XLA transpose): per-(batch, head) (N, D) blocks
    #    so the attention kernel never holds a sublane-padded (N, 3, C) slab.
    qkv = qkv2d.reshape(B, N, 3, H, D).transpose(2, 0, 3, 1, 4)  # (3, B, H, N, D)
    o = pallas_flash_attention(qkv[0], qkv[1], qkv[2], scale)    # (B, H, N, D)

    # 3) Merge heads + output projection with bias (proj_drop is identity).
    o2d = o.transpose(0, 2, 1, 3).reshape(B * N, C)
    y2d = pallas_matmul(o2d, params["w_proj"].astype(cdt), params["b_proj"],
                        out_dtype=x.dtype)
    return y2d.reshape(B, N, C)


# ---------------------------------------------------------------------------
# Pure-JAX reference for correctness checking
# ---------------------------------------------------------------------------
def attention_reference(x, params, num_heads):
    B, N, C = x.shape
    H = num_heads
    D = C // H
    scale = D ** (-0.5)
    qkv = (x.reshape(B * N, C) @ params["w_qkv"]).reshape(B, N, 3, H, D)
    q = jnp.transpose(qkv[:, :, 0], (0, 2, 1, 3))
    k = jnp.transpose(qkv[:, :, 1], (0, 2, 1, 3))
    v = jnp.transpose(qkv[:, :, 2], (0, 2, 1, 3))
    s = jnp.einsum("bhnd,bhmd->bhnm", q, k) * scale
    p = jax.nn.softmax(s, axis=-1)
    o = jnp.einsum("bhnm,bhmd->bhnd", p, v)
    o = jnp.transpose(o, (0, 2, 1, 3)).reshape(B * N, C)
    y = o @ params["w_proj"] + params["b_proj"]
    return y.reshape(B, N, C)


# ---------------------------------------------------------------------------
if __name__ == "__main__":
    # Small shapes consistent with the module: B=2, N=16 tokens, dim=32, 8 heads.
    B, N, C = 2, 16, 32
    NUM_HEADS = 8

    key = jax.random.PRNGKey(0)
    kx, kqkv, kproj, kb = jax.random.split(key, 4)

    x = jax.random.normal(kx, (B, N, C), dtype=jnp.float32)

    # Weights stored (in_features, out_features) so kernels compute x @ W
    # directly (equivalent to torch's x @ W.T with W stored transposed).
    params = {
        "w_qkv": 0.02 * jax.random.normal(kqkv, (C, 3 * C), dtype=jnp.float32),
        "w_proj": 0.02 * jax.random.normal(kproj, (C, C), dtype=jnp.float32),
        "b_proj": 0.02 * jax.random.normal(kb, (C,), dtype=jnp.float32),
    }

    y_ref = attention_reference(x, params, NUM_HEADS)

    # f32 compute path (tolerance covers the EUP approximate reciprocal).
    fwd_f32 = jax.jit(functools.partial(attention_forward, num_heads=NUM_HEADS))
    y = jax.block_until_ready(fwd_f32(x, params))
    assert y.shape == (B, N, C)
    assert jnp.allclose(y, y_ref, atol=2e-3, rtol=2e-3), "f32 Pallas mismatch"

    # bf16 MXU-operand path (f32 accumulation and f32 softmax statistics).
    fwd_bf16 = jax.jit(functools.partial(
        attention_forward, num_heads=NUM_HEADS, compute_dtype=jnp.bfloat16))
    y_bf16 = jax.block_until_ready(fwd_bf16(x, params))
    assert y_bf16.shape == (B, N, C)
    assert jnp.allclose(y_bf16, y_ref, atol=5e-2, rtol=5e-2), "bf16 Pallas mismatch"

    # TODO(synk): attn_drop / proj_drop are identity here (inference / p=0.0);
    # a training-mode dropout would need pltpu.prng_* inside the kernels.
    print("KERNEL_OK")
</pallas_src>

<mosaic_0001>
module attributes {stable_mosaic.version = 11 : i64} {
  func.func @_matmul_kernel(%arg0: i32, %arg1: i32, %arg2: i32, %arg3: memref<32x128xf32, #tpu.memory_space<vmem>>, %arg4: memref<128x128xf32, #tpu.memory_space<vmem>>, %arg5: memref<32x128xf32, #tpu.memory_space<vmem>>, %arg6: memref<32x128xf32, #tpu.memory_space<vmem>>) attributes {dimension_semantics = [#tpu.dimension_semantics<parallel>, #tpu.dimension_semantics<parallel>, #tpu.dimension_semantics<arbitrary>], iteration_bounds = array<i64: 1, 1, 1>, scalar_prefetch = 0 : i64, scratch_operands = 1 : i64, tpu.core_type = #tpu.core_type<tc>, window_params = [{transform_indices = @transform_0, window_bounds = array<i64: 32, 128>}, {transform_indices = @transform_1, window_bounds = array<i64: 128, 128>}, {transform_indices = @transform_2, window_bounds = array<i64: 32, 128>}]} {
    %c0_i32 = arith.constant 0 : i32
    %0 = arith.cmpi eq, %arg2, %c0_i32 : i32
    %1 = arith.extui %0 : i1 to i32
    %c0_i32_0 = arith.constant 0 : i32
    %2 = arith.cmpi ne, %1, %c0_i32_0 : i32
    scf.if %2 {
      %cst_10 = arith.constant 0.000000e+00 : f32
      %12 = vector.broadcast %cst_10 : f32 to vector<32x128xf32>
      %c0_11 = arith.constant 0 : index
      %c0_12 = arith.constant 0 : index
      %13 = vector.load %arg6[%c0_11, %c0_12] : memref<32x128xf32, #tpu.memory_space<vmem>>, vector<32x128xf32>
      tpu.vector_store %arg6[%c0_11, %c0_12], %12 {strides = array<i32>} : memref<32x128xf32, #tpu.memory_space<vmem>>, vector<32x128xf32>,
    } else {
    }
    %c0 = arith.constant 0 : index
    %c0_1 = arith.constant 0 : index
    %3 = vector.load %arg6[%c0, %c0_1] : memref<32x128xf32, #tpu.memory_space<vmem>>, vector<32x128xf32>
    %c0_2 = arith.constant 0 : index
    %c0_3 = arith.constant 0 : index
    %4 = vector.load %arg3[%c0_2, %c0_3] : memref<32x128xf32, #tpu.memory_space<vmem>>, vector<32x128xf32>
    %c0_4 = arith.constant 0 : index
    %c0_5 = arith.constant 0 : index
    %5 = vector.load %arg4[%c0_4, %c0_5] : memref<128x128xf32, #tpu.memory_space<vmem>>, vector<128x128xf32>
    %cst = arith.constant dense<0.000000e+00> : vector<32x128xf32>
    %6 = tpu.matmul %4, %5, %cst {dimension_numbers = #tpu.dot_dimension_numbers<[1], [0], [0], [1], [0, 0, 1, 1], [], []>} : vector<32x128xf32>, vector<128x128xf32>, vector<32x128xf32> -> vector<32x128xf32>
    %7 = arith.addf %3, %6 : vector<32x128xf32>
    %c0_6 = arith.constant 0 : index
    %c0_7 = arith.constant 0 : index
    %8 = vector.load %arg6[%c0_6, %c0_7] : memref<32x128xf32, #tpu.memory_space<vmem>>, vector<32x128xf32>
    tpu.vector_store %arg6[%c0_6, %c0_7], %7 {strides = array<i32>} : memref<32x128xf32, #tpu.memory_space<vmem>>, vector<32x128xf32>,
    %c0_i32_8 = arith.constant 0 : i32
    %9 = arith.cmpi eq, %arg2, %c0_i32_8 : i32
    %10 = arith.extui %9 : i1 to i32
    %c0_i32_9 = arith.constant 0 : i32
    %11 = arith.cmpi ne, %10, %c0_i32_9 : i32
    scf.if %11 {
      %c0_10 = arith.constant 0 : index
      %c0_11 = arith.constant 0 : index
      %12 = vector.load %arg6[%c0_10, %c0_11] : memref<32x128xf32, #tpu.memory_space<vmem>>, vector<32x128xf32>
      %c0_12 = arith.constant 0 : index
      %c0_13 = arith.constant 0 : index
      %13 = vector.load %arg5[%c0_12, %c0_13] : memref<32x128xf32, #tpu.memory_space<vmem>>, vector<32x128xf32>
      tpu.vector_store %arg5[%c0_12, %c0_13], %12 {strides = array<i32>} : memref<32x128xf32, #tpu.memory_space<vmem>>, vector<32x128xf32>,
    } else {
    }
    return
  }
  func.func @transform_0(%arg0: i32, %arg1: i32, %arg2: i32) -> (i32, i32) {
    %c0_i32 = arith.constant 0 : i32
    return %arg0, %arg2 : i32, i32
  }
  func.func @transform_1(%arg0: i32, %arg1: i32, %arg2: i32) -> (i32, i32) {
    %c0_i32 = arith.constant 0 : i32
    return %arg2, %arg1 : i32, i32
  }
  func.func @transform_2(%arg0: i32, %arg1: i32, %arg2: i32) -> (i32, i32) {
    %c0_i32 = arith.constant 0 : i32
    return %arg0, %arg1 : i32, i32
  }
}

module attributes {stable_mosaic.version = 11 : i64} {
  func.func @_flash_attn_kernel(%arg0: i32, %arg1: i32, %arg2: i32, %arg3: i32, %arg4: memref<1x1x16x4xf32, #tpu.memory_space<vmem>>, %arg5: memref<1x1x16x4xf32, #tpu.memory_space<vmem>>, %arg6: memref<1x1x16x4xf32, #tpu.memory_space<vmem>>, %arg7: memref<1x1x16x4xf32, #tpu.memory_space<vmem>>, %arg8: memref<16x1xf32, #tpu.memory_space<vmem>>, %arg9: memref<16x1xf32, #tpu.memory_space<vmem>>, %arg10: memref<16x4xf32, #tpu.memory_space<vmem>>) attributes {dimension_semantics = [#tpu.dimension_semantics<parallel>, #tpu.dimension_semantics<parallel>, #tpu.dimension_semantics<parallel>, #tpu.dimension_semantics<arbitrary>], iteration_bounds = array<i64: 2, 8, 1, 1>, scalar_prefetch = 0 : i64, scratch_operands = 3 : i64, tpu.core_type = #tpu.core_type<tc>, window_params = [{transform_indices = @transform_0, window_bounds = array<i64: 1, 1, 16, 4>}, {transform_indices = @transform_1, window_bounds = array<i64: 1, 1, 16, 4>}, {transform_indices = @transform_2, window_bounds = array<i64: 1, 1, 16, 4>}, {transform_indices = @transform_3, window_bounds = array<i64: 1, 1, 16, 4>}]} {
    %c0_i32 = arith.constant 0 : i32
    %0 = arith.cmpi eq, %arg3, %c0_i32 : i32
    %1 = arith.extui %0 : i1 to i32
    %c0_i32_0 = arith.constant 0 : i32
    %2 = arith.cmpi ne, %1, %c0_i32_0 : i32
    scf.if %2 {
      %cst_30 = arith.constant 0xFF800000 : f32
      %37 = vector.broadcast %cst_30 : f32 to vector<16x1xf32>
      %c0_31 = arith.constant 0 : index
      %c0_32 = arith.constant 0 : index
      %38 = vector.load %arg8[%c0_31, %c0_32] : memref<16x1xf32, #tpu.memory_space<vmem>>, vector<16x1xf32>
      tpu.vector_store %arg8[%c0_31, %c0_32], %37 {strides = array<i32>} : memref<16x1xf32, #tpu.memory_space<vmem>>, vector<16x1xf32>,
      %cst_33 = arith.constant 0.000000e+00 : f32
      %39 = vector.broadcast %cst_33 : f32 to vector<16x1xf32>
      %c0_34 = arith.constant 0 : index
      %c0_35 = arith.constant 0 : index
      %40 = vector.load %arg9[%c0_34, %c0_35] : memref<16x1xf32, #tpu.memory_space<vmem>>, vector<16x1xf32>
      tpu.vector_store %arg9[%c0_34, %c0_35], %39 {strides = array<i32>} : memref<16x1xf32, #tpu.memory_space<vmem>>, vector<16x1xf32>,
      %cst_36 = arith.constant 0.000000e+00 : f32
      %41 = vector.broadcast %cst_36 : f32 to vector<16x4xf32>
      %c0_37 = arith.constant 0 : index
      %c0_38 = arith.constant 0 : index
      %42 = vector.load %arg10[%c0_37, %c0_38] : memref<16x4xf32, #tpu.memory_space<vmem>>, vector<16x4xf32>
      tpu.vector_store %arg10[%c0_37, %c0_38], %41 {strides = array<i32>} : memref<16x4xf32, #tpu.memory_space<vmem>>, vector<16x4xf32>,
    } else {
    }
    %c0 = arith.constant 0 : index
    %c0_1 = arith.constant 0 : index
    %c0_2 = arith.constant 0 : index
    %c0_3 = arith.constant 0 : index
    %3 = vector.load %arg4[%c0, %c0_1, %c0_2, %c0_3] : memref<1x1x16x4xf32, #tpu.memory_space<vmem>>, vector<1x1x16x4xf32>
    %4 = vector.shape_cast %3 : vector<1x1x16x4xf32> to vector<16x4xf32>
    %cst = arith.constant 5.000000e-01 : f32
    %5 = vector.broadcast %cst : f32 to vector<16x4xf32>
    %6 = arith.mulf %4, %5 : vector<16x4xf32>
    %c0_4 = arith.constant 0 : index
    %c0_5 = arith.constant 0 : index
    %c0_6 = arith.constant 0 : index
    %c0_7 = arith.constant 0 : index
    %7 = vector.load %arg5[%c0_4, %c0_5, %c0_6, %c0_7] : memref<1x1x16x4xf32, #tpu.memory_space<vmem>>, vector<1x1x16x4xf32>
    %8 = vector.shape_cast %7 : vector<1x1x16x4xf32> to vector<16x4xf32>
    %cst_8 = arith.constant dense<0.000000e+00> : vector<16x16xf32>
    %9 = tpu.matmul %6, %8, %cst_8 {dimension_numbers = #tpu.dot_dimension_numbers<[1], [1], [0], [0], [0, 0, 1, 0], [], []>} : vector<16x4xf32>, vector<16x4xf32>, vector<16x16xf32> -> vector<16x16xf32>
    %c0_9 = arith.constant 0 : index
    %c0_10 = arith.constant 0 : index
    %10 = vector.load %arg8[%c0_9, %c0_10] : memref<16x1xf32, #tpu.memory_space<vmem>>, vector<16x1xf32>
    %cst_11 = arith.constant dense<0xFF800000> : vector<16xf32>
    %11 = vector.multi_reduction <maximumf>, %9, %cst_11 [1] : vector<16x16xf32> to vector<16xf32>
    %12 = vector.shape_cast %11 : vector<16xf32> to vector<16x1xf32>
    %13 = arith.maximumf %10, %12 : vector<16x1xf32>
    %14 = arith.subf %10, %13 : vector<16x1xf32>
    %15 = math.exp %14 : vector<16x1xf32>
    %16 = vector.broadcast %13 : vector<16x1xf32> to vector<16x16xf32>
    %17 = arith.subf %9, %16 : vector<16x16xf32>
    %18 = math.exp %17 : vector<16x16xf32>
    %c0_12 = arith.constant 0 : index
    %c0_13 = arith.constant 0 : index
    %19 = vector.load %arg9[%c0_12, %c0_13] : memref<16x1xf32, #tpu.memory_space<vmem>>, vector<16x1xf32>
    %20 = arith.mulf %15, %19 : vector<16x1xf32>
    %cst_14 = arith.constant dense<0.000000e+00> : vector<16xf32>
    %21 = vector.multi_reduction <add>, %18, %cst_14 [1] : vector<16x16xf32> to vector<16xf32>
    %22 = vector.shape_cast %21 : vector<16xf32> to vector<16x1xf32>
    %23 = arith.addf %20, %22 : vector<16x1xf32>
    %c0_15 = arith.constant 0 : index
    %c0_16 = arith.constant 0 : index
    %24 = vector.load %arg9[%c0_15, %c0_16] : memref<16x1xf32, #tpu.memory_space<vmem>>, vector<16x1xf32>
    tpu.vector_store %arg9[%c0_15, %c0_16], %23 {strides = array<i32>} : memref<16x1xf32, #tpu.memory_space<vmem>>, vector<16x1xf32>,
    %c0_17 = arith.constant 0 : index
    %c0_18 = arith.constant 0 : index
    %25 = vector.load %arg10[%c0_17, %c0_18] : memref<16x4xf32, #tpu.memory_space<vmem>>, vector<16x4xf32>
    %26 = vector.broadcast %15 : vector<16x1xf32> to vector<16x4xf32>
    %27 = arith.mulf %26, %25 : vector<16x4xf32>
    %c0_19 = arith.constant 0 : index
    %c0_20 = arith.constant 0 : index
    %c0_21 = arith.constant 0 : index
    %c0_22 = arith.constant 0 : index
    %28 = vector.load %arg6[%c0_19, %c0_20, %c0_21, %c0_22] : memref<1x1x16x4xf32, #tpu.memory_space<vmem>>, vector<1x1x16x4xf32>
    %29 = vector.shape_cast %28 : vector<1x1x16x4xf32> to vector<16x4xf32>
    %cst_23 = arith.constant dense<0.000000e+00> : vector<16x4xf32>
    %30 = tpu.matmul %18, %29, %cst_23 {dimension_numbers = #tpu.dot_dimension_numbers<[1], [0], [0], [1], [0, 0, 1, 1], [], []>} : vector<16x16xf32>, vector<16x4xf32>, vector<16x4xf32> -> vector<16x4xf32>
    %31 = arith.addf %27, %30 : vector<16x4xf32>
    %c0_24 = arith.constant 0 : index
    %c0_25 = arith.constant 0 : index
    %32 = vector.load %arg10[%c0_24, %c0_25] : memref<16x4xf32, #tpu.memory_space<vmem>>, vector<16x4xf32>
    tpu.vector_store %arg10[%c0_24, %c0_25], %31 {strides = array<i32>} : memref<16x4xf32, #tpu.memory_space<vmem>>, vector<16x4xf32>,
    %c0_26 = arith.constant 0 : index
    %c0_27 = arith.constant 0 : index
    %33 = vector.load %arg8[%c0_26, %c0_27] : memref<16x1xf32, #tpu.memory_space<vmem>>, vector<16x1xf32>
    tpu.vector_store %arg8[%c0_26, %c0_27], %13 {strides = array<i32>} : memref<16x1xf32, #tpu.memory_space<vmem>>, vector<16x1xf32>,
    %c0_i32_28 = arith.constant 0 : i32
    %34 = arith.cmpi eq, %arg3, %c0_i32_28 : i32
    %35 = arith.extui %34 : i1 to i32
    %c0_i32_29 = arith.constant 0 : i32
    %36 = arith.cmpi ne, %35, %c0_i32_29 : i32
    scf.if %36 {
      %c0_30 = arith.constant 0 : index
      %c0_31 = arith.constant 0 : index
      %37 = vector.load %arg9[%c0_30, %c0_31] : memref<16x1xf32, #tpu.memory_space<vmem>>, vector<16x1xf32>
      %38 = tpu.reciprocal %37 {approx = true} : vector<16x1xf32> -> vector<16x1xf32>
      %c0_32 = arith.constant 0 : index
      %c0_33 = arith.constant 0 : index
      %39 = vector.load %arg10[%c0_32, %c0_33] : memref<16x4xf32, #tpu.memory_space<vmem>>, vector<16x4xf32>
      %40 = vector.broadcast %38 : vector<16x1xf32> to vector<16x4xf32>
      %41 = arith.mulf %39, %40 : vector<16x4xf32>
      %c0_34 = arith.constant 0 : index
      %c0_35 = arith.constant 0 : index
      %c0_36 = arith.constant 0 : index
      %c0_37 = arith.constant 0 : index
      %42 = vector.load %arg7[%c0_34, %c0_35, %c0_36, %c0_37] : memref<1x1x16x4xf32, #tpu.memory_space<vmem>>, vector<1x1x16x4xf32>
      %43 = vector.shape_cast %42 : vector<1x1x16x4xf32> to vector<16x4xf32>
      %44 = vector.shape_cast %41 : vector<16x4xf32> to vector<1x1x16x4xf32>
      tpu.vector_store %arg7[%c0_34, %c0_35, %c0_36, %c0_37], %44 {strides = array<i32>} : memref<1x1x16x4xf32, #tpu.memory_space<vmem>>, vector<1x1x16x4xf32>,
    } else {
    }
    return
  }
  func.func @transform_0(%arg0: i32, %arg1: i32, %arg2: i32, %arg3: i32) -> (i32, i32, i32, i32) {
    %c0_i32 = arith.constant 0 : i32
    %c0_i32_0 = arith.constant 0 : i32
    return %arg0, %arg1, %arg2, %c0_i32 : i32, i32, i32, i32
  }
  func.func @transform_1(%arg0: i32, %arg1: i32, %arg2: i32, %arg3: i32) -> (i32, i32, i32, i32) {
    %c0_i32 = arith.constant 0 : i32
    %c0_i32_0 = arith.constant 0 : i32
    return %arg0, %arg1, %arg3, %c0_i32 : i32, i32, i32, i32
  }
  func.func @transform_2(%arg0: i32, %arg1: i32, %arg2: i32, %arg3: i32) -> (i32, i32, i32, i32) {
    %c0_i32 = arith.constant 0 : i32
    %c0_i32_0 = arith.constant 0 : i32
    return %arg0, %arg1, %arg3, %c0_i32 : i32, i32, i32, i32
  }
  func.func @transform_3(%arg0: i32, %arg1: i32, %arg2: i32, %arg3: i32) -> (i32, i32, i32, i32) {
    %c0_i32 = arith.constant 0 : i32
    %c0_i32_0 = arith.constant 0 : i32
    return %arg0, %arg1, %arg2, %c0_i32 : i32, i32, i32, i32
  }
}

module attributes {stable_mosaic.version = 11 : i64} {
  func.func @_matmul_bias_kernel(%arg0: i32, %arg1: i32, %arg2: i32, %arg3: memref<32x128xf32, #tpu.memory_space<vmem>>, %arg4: memref<128x128xf32, #tpu.memory_space<vmem>>, %arg5: memref<1x128xf32, #tpu.memory_space<vmem>>, %arg6: memref<32x128xf32, #tpu.memory_space<vmem>>, %arg7: memref<32x128xf32, #tpu.memory_space<vmem>>) attributes {dimension_semantics = [#tpu.dimension_semantics<parallel>, #tpu.dimension_semantics<parallel>, #tpu.dimension_semantics<arbitrary>], iteration_bounds = array<i64: 1, 1, 1>, scalar_prefetch = 0 : i64, scratch_operands = 1 : i64, tpu.core_type = #tpu.core_type<tc>, window_params = [{transform_indices = @transform_0, window_bounds = array<i64: 32, 128>}, {transform_indices = @transform_1, window_bounds = array<i64: 128, 128>}, {transform_indices = @transform_2, window_bounds = array<i64: 1, 128>}, {transform_indices = @transform_3, window_bounds = array<i64: 32, 128>}]} {
    %c0_i32 = arith.constant 0 : i32
    %0 = arith.cmpi eq, %arg2, %c0_i32 : i32
    %1 = arith.extui %0 : i1 to i32
    %c0_i32_0 = arith.constant 0 : i32
    %2 = arith.cmpi ne, %1, %c0_i32_0 : i32
    scf.if %2 {
      %cst_10 = arith.constant 0.000000e+00 : f32
      %12 = vector.broadcast %cst_10 : f32 to vector<32x128xf32>
      %c0_11 = arith.constant 0 : index
      %c0_12 = arith.constant 0 : index
      %13 = vector.load %arg7[%c0_11, %c0_12] : memref<32x128xf32, #tpu.memory_space<vmem>>, vector<32x128xf32>
      tpu.vector_store %arg7[%c0_11, %c0_12], %12 {strides = array<i32>} : memref<32x128xf32, #tpu.memory_space<vmem>>, vector<32x128xf32>,
    } else {
    }
    %c0 = arith.constant 0 : index
    %c0_1 = arith.constant 0 : index
    %3 = vector.load %arg7[%c0, %c0_1] : memref<32x128xf32, #tpu.memory_space<vmem>>, vector<32x128xf32>
    %c0_2 = arith.constant 0 : index
    %c0_3 = arith.constant 0 : index
    %4 = vector.load %arg3[%c0_2, %c0_3] : memref<32x128xf32, #tpu.memory_space<vmem>>, vector<32x128xf32>
    %c0_4 = arith.constant 0 : index
    %c0_5 = arith.constant 0 : index
    %5 = vector.load %arg4[%c0_4, %c0_5] : memref<128x128xf32, #tpu.memory_space<vmem>>, vector<128x128xf32>
    %cst = arith.constant dense<0.000000e+00> : vector<32x128xf32>
    %6 = tpu.matmul %4, %5, %cst {dimension_numbers = #tpu.dot_dimension_numbers<[1], [0], [0], [1], [0, 0, 1, 1], [], []>} : vector<32x128xf32>, vector<128x128xf32>, vector<32x128xf32> -> vector<32x128xf32>
    %7 = arith.addf %3, %6 : vector<32x128xf32>
    %c0_6 = arith.constant 0 : index
    %c0_7 = arith.constant 0 : index
    %8 = vector.load %arg7[%c0_6, %c0_7] : memref<32x128xf32, #tpu.memory_space<vmem>>, vector<32x128xf32>
    tpu.vector_store %arg7[%c0_6, %c0_7], %7 {strides = array<i32>} : memref<32x128xf32, #tpu.memory_space<vmem>>, vector<32x128xf32>,
    %c0_i32_8 = arith.constant 0 : i32
    %9 = arith.cmpi eq, %arg2, %c0_i32_8 : i32
    %10 = arith.extui %9 : i1 to i32
    %c0_i32_9 = arith.constant 0 : i32
    %11 = arith.cmpi ne, %10, %c0_i32_9 : i32
    scf.if %11 {
      %c0_10 = arith.constant 0 : index
      %c0_11 = arith.constant 0 : index
      %12 = vector.load %arg7[%c0_10, %c0_11] : memref<32x128xf32, #tpu.memory_space<vmem>>, vector<32x128xf32>
      %c0_12 = arith.constant 0 : index
      %c0_13 = arith.constant 0 : index
      %13 = vector.load %arg5[%c0_12, %c0_13] : memref<1x128xf32, #tpu.memory_space<vmem>>, vector<1x128xf32>
      %14 = vector.broadcast %13 : vector<1x128xf32> to vector<32x128xf32>
      %15 = arith.addf %12, %14 : vector<32x128xf32>
      %c0_14 = arith.constant 0 : index
      %c0_15 = arith.constant 0 : index
      %16 = vector.load %arg6[%c0_14, %c0_15] : memref<32x128xf32, #tpu.memory_space<vmem>>, vector<32x128xf32>
      tpu.vector_store %arg6[%c0_14, %c0_15], %15 {strides = array<i32>} : memref<32x128xf32, #tpu.memory_space<vmem>>, vector<32x128xf32>,
    } else {
    }
    return
  }
  func.func @transform_0(%arg0: i32, %arg1: i32, %arg2: i32) -> (i32, i32) {
    %c0_i32 = arith.constant 0 : i32
    return %arg0, %arg2 : i32, i32
  }
  func.func @transform_1(%arg0: i32, %arg1: i32, %arg2: i32) -> (i32, i32) {
    %c0_i32 = arith.constant 0 : i32
    return %arg2, %arg1 : i32, i32
  }
  func.func @transform_2(%arg0: i32, %arg1: i32, %arg2: i32) -> (i32, i32) {
    %c0_i32 = arith.constant 0 : i32
    %c0_i32_0 = arith.constant 0 : i32
    return %c0_i32, %arg1 : i32, i32
  }
  func.func @transform_3(%arg0: i32, %arg1: i32, %arg2: i32) -> (i32, i32) {
    %c0_i32 = arith.constant 0 : i32
    return %arg0, %arg1 : i32, i32
  }
}

</mosaic_0001>

<bundles_post_ra>
// kernel: attention_forward.3
= control target key start
LH: loop header
LB: loop body
LE: loop exit
PB: predicated region body
PF: predicated region fallthrough
CT: control target
= control target key end

     0   :  { %s344_s1 = inlined_call_operand.vmem [shape: f32[128,128], index: 1, kind: input, shape index: {}]   ;;  %s345_s0 = inlined_call_operand.vmem [shape: f32[32,128], index: 0, kind: input, shape index: {}]   ;;  %s346_s2 = inlined_call_operand.vmem [shape: f32[32,128], index: 2, kind: output, shape index: {}]  }
   0x1   :  { %v27_v0 = vld [vmem:[%s344_s1] sm:$0xff]  ;;  %v28_v1 = vld [vmem:[%s344_s1 + $0x8] sm:$0xff]  ;;  %v29_v2 = vld [vmem:[%s344_s1 + $0x10] sm:$0xff] }
   0x2   :  { %v209_v3 = vpack.c.bf16 %v28_v1, %v27_v0  ;;  %v30_v4 = vld [vmem:[%s344_s1 + $0x18] sm:$0xff]  ;;  %v31_v6 = vld [vmem:[%s344_s1 + $0x20] sm:$0xff]  ;;  %v32_v7 = vld [vmem:[%s344_s1 + $0x28] sm:$0xff] }
   0x3   :  { %v213_v5 = vpack.c.bf16 %v30_v4, %v29_v2  ;;  %v217_v8 = vpack.c.bf16 %v32_v7, %v31_v6  ;;  %v23_v9 = vld [vmem:[%s345_s0] sm:$0xff]  ;;  %v25_v10 = vld [vmem:[%s345_s0 + $0x10] sm:$0xff]  ;;  %v34_v12 = vld [vmem:[%s344_s1 + $0x38] sm:$0xff] }
   0x4   :  { %210 = vmatprep.subr.bf16.mxu0 %v209_v3  ;;  %241 = vmatprep.subr.bf16.mxu1 %v209_v3  ;;  %v33_v11 = vld [vmem:[%s344_s1 + $0x30] sm:$0xff]  ;;  %v35_v14 = vld [vmem:[%s344_s1 + $0x40] sm:$0xff]  ;;  %v36_v15 = vld [vmem:[%s344_s1 + $0x48] sm:$0xff] }
   0x5   :  { %212 = vmatpush3.bf16.msra.mxu0 %v209_v3  ;;  %249 = vmatpush3.bf16.msra.mxu1 %v209_v3  ;;  %v221_v13 = vpack.c.bf16 %v34_v12, %v33_v11  ;;  %v225_v16 = vpack.c.bf16 %v36_v15, %v35_v14  ;;  %v37_v17 = vld [vmem:[%s344_s1 + $0x50] sm:$0xff]  ;;  %v38_v18 = vld [vmem:[%s344_s1 + $0x58] sm:$0xff]  ;;  %v39_v20 = vld [vmem:[%s344_s1 + $0x60] sm:$0xff] }
   0x6   :  { %214 = vmatprep.subr.bf16.mxu0 %v213_v5  ;;  %242 = vmatprep.subr.bf16.mxu1 %v213_v5  ;;  %v229_v19 = vpack.c.bf16 %v38_v18, %v37_v17  ;;  %v40_v21 = vld [vmem:[%s344_s1 + $0x68] sm:$0xff]  ;;  %v41_v23 = vld [vmem:[%s344_s1 + $0x70] sm:$0xff]  ;;  %v42_v24 = vld [vmem:[%s344_s1 + $0x78] sm:$0xff] }
   0x7   :  { %203 = vmatprep.mubr.f32.mxu0 %v23_v9  ;;  %206 = vmatprep.mubr.f32.mxu1 %v25_v10  ;;  %v233_v22 = vpack.c.bf16 %v40_v21, %v39_v20  ;;  %v237_v25 = vpack.c.bf16 %v42_v24, %v41_v23  ;;  %v24_v26 = vld [vmem:[%s345_s0 + $0x8] sm:$0xff]  ;;  %v26_v27 = vld [vmem:[%s345_s0 + $0x18] sm:$0xff] }
   0x9   :  { %216 = vmatpush3.bf16.msra.mxu0 %v213_v5  ;;  %250 = vmatpush3.bf16.msra.mxu1 %v213_v5 }
   0xa   :  { %218 = vmatprep.subr.bf16.mxu0 %v217_v8  ;;  %243 = vmatprep.subr.bf16.mxu1 %v217_v8 }
   0xd   :  { %220 = vmatpush3.bf16.msra.mxu0 %v217_v8  ;;  %251 = vmatpush3.bf16.msra.mxu1 %v217_v8 }
   0xe   :  { %222 = vmatprep.subr.bf16.mxu0 %v221_v13  ;;  %244 = vmatprep.subr.bf16.mxu1 %v221_v13 }
  0x11   :  { %224 = vmatpush3.bf16.msra.mxu0 %v221_v13  ;;  %252 = vmatpush3.bf16.msra.mxu1 %v221_v13 }
  0x12   :  { %226 = vmatprep.subr.bf16.mxu0 %v225_v16  ;;  %245 = vmatprep.subr.bf16.mxu1 %v225_v16 }
  0x15   :  { %228 = vmatpush3.bf16.msra.mxu0 %v225_v16  ;;  %253 = vmatpush3.bf16.msra.mxu1 %v225_v16 }
  0x16   :  { %230 = vmatprep.subr.bf16.mxu0 %v229_v19  ;;  %246 = vmatprep.subr.bf16.mxu1 %v229_v19 }
  0x19   :  { %232 = vmatpush3.bf16.msra.mxu0 %v229_v19  ;;  %254 = vmatpush3.bf16.msra.mxu1 %v229_v19 }
  0x1a   :  { %234 = vmatprep.subr.bf16.mxu0 %v233_v22  ;;  %247 = vmatprep.subr.bf16.mxu1 %v233_v22 }
  0x1d   :  { %236 = vmatpush3.bf16.msra.mxu0 %v233_v22  ;;  %255 = vmatpush3.bf16.msra.mxu1 %v233_v22 }
  0x1e   :  { %238 = vmatprep.subr.bf16.mxu0 %v237_v25  ;;  %248 = vmatprep.subr.bf16.mxu1 %v237_v25 }
  0x21   :  { %240 = vmatpush3.bf16.msra.mxu0 %v237_v25  ;;  %256 = vmatpush3.bf16.msra.mxu1 %v237_v25 }
  0x24   :  { %204 = vmatmul.mubr.f32.vlgmr.msra.gmra.mrb[0].mxu0 %v24_v26  ;;  %207 = vmatmul.mubr.f32.vlgmr.msra.gmra.mrb[0].mxu1 %v26_v27 }
  0xf7   :  { %v205_v28 = vpop.f32.mrb[0].mxu0  ;;  %v208_v29 = vpop.f32.mrb[0].mxu1 }
  0xf8   :  { %144 = vst [vmem:[%s346_s2 + $0x8] sm:$0xff] %v205_v28  ;;  %146 = vst [vmem:[%s346_s2 + $0x18] sm:$0xff] %v208_v29  ;;  %v109_v30 = vpop.f32.mrb[1].mxu0  ;;  %v119_v31 = vpop.f32.mrb[1].mxu1 }
  0xf9   :  { %143 = vst [vmem:[%s346_s2] sm:$0xff] %v109_v30  ;;  %145 = vst [vmem:[%s346_s2 + $0x10] sm:$0xff] %v119_v31 }

// kernel: attention_forward.4
= control target key start
LH: loop header
LB: loop body
LE: loop exit
PB: predicated region body
PF: predicated region fallthrough
CT: control target
= control target key end

     0   :  { %s971_s12 = smov 0   ;;  %s973_s13 = smov 0   ;;  %s1058_s0 = inlined_call_operand.vmem [shape: f32[2,8,16,4], index: 0, kind: input, shape index: {}]   ;;  %s1059_s1 = inlined_call_operand.vmem [shape: f32[2,8,16,4], index: 1, kind: input, shape index: {}]   ;;  %s1060_s2 = inlined_call_operand.vmem [shape: f32[2,8,16,4], index: 2, kind: input, shape index: {}]   ;;  %s1061_s3 = inlined_call_operand.vmem [shape: f32[2,8,16,4], index: 3, kind: output, shape index: {}]  }
   0x1   :  { %s975_s14 = smov 0   ;;  %s977_s15 = smov 0  }
   0x2   :  { %s979_s16 = smov 0  }
   0x3 LB: > { %s35_s17 = sadd.s32 1, %s938_s14  ;;  %s39_s18 = sadd.s32 1, %s942_s15  ;;  %s946_s16 = sphi %s979_s16, %s13_s16   ;;  %s942_s15 = sphi %s977_s15, %s1065_s15   ;;  %s938_s14 = sphi %s975_s14, %s1064_s14   ;;  %s934_s13 = sphi %s973_s13, %s1063_s13   ;;  %s930_s12 = sphi %s971_s12, %s1062_s12  }
   0x4   : > { %p37_p0 = scmp.ge.s32.totalorder %s35_s17, 8  ;;  %p798_p1 = scmp.ge.s32.totalorder %s946_s16, 1 }
   0x5   : > { %p226_p2 = scmp.lt.s32.totalorder %s946_s16, 17 }
   0x6   : > { %s1067_s17 = smov (%p37_p0, %s35_s17), 0  ;;  %s1069_s18 = smov (!%p37_p0, %s39_s18), %s942_s15 }
   0x7   : > { %p227_p3 = pnand %p798_p1, %p226_p2  ;;  %p41_p4 = scmp.ge.s32.totalorder %s1069_s18, 2 }
   0x8   : > { %p293_p5 = scmp.lt.s32.totalorder (!%p227_p3), %s934_s13, 1  ;;  %p295_p6 = scmp.lt.s32.totalorder (!%p227_p3), %s930_s12, 7  ;;  %vm357_vm0 = vcmask (!%p227_p3), 31744   ;;  %vm352_vm2 = vcmask (!%p227_p3), 7168   ;;  %v948_v7 = vmov (!%p227_p3), -inf   ;;  %vm456_vm3 = vcmask (!%p227_p3), 130048  }
   0x9   : > { %s1071_s18 = smov (%p41_p4, %s1069_s18), 0  ;;  %230 = sbr.rel (%p227_p3) target bundleno = 832 (0x340), region = 32 }
   0xa   : > { %vm842_vm1 = vmpackc.low (!%p227_p3), %vm357_vm0, %vm357_vm0  ;;  %353 = vst.msk [vmem:[#allocation2] sm:$0xff] (!%p227_p3), %vm352_vm2, %v948_v7  ;;  %v949_v12 = vmov (!%p227_p3), 0   ;;  %v950_v13 = vmov (!%p227_p3), 0.0  }
   0xb   : > { %354 = vst.msk [vmem:[#allocation2 + $0x8] sm:$0xff] (!%p227_p3), %vm352_vm2, %v948_v7  ;;  %894 = vset.pattern.permute.xlu1 (!%p227_p3), %v949_v12  ;;  %895 = vset.pattern.permute.xlu0 (!%p227_p3), %v949_v12  ;;  %355 = vst.msk [vmem:[#allocation3] sm:$0xff] (!%p227_p3), %vm352_vm2, %v950_v13 }
   0xc   : > { %358 = vst.msk [vmem:[#allocation4] sm:$0xff] (!%p227_p3), %vm357_vm0, %v950_v13  ;;  %359 = vst.msk [vmem:[#allocation4 + $0x8] sm:$0xff] (!%p227_p3), %vm357_vm0, %v950_v13 }
   0xd   : > { %356 = vst.msk [vmem:[#allocation3 + $0x8] sm:$0xff] (!%p227_p3), %vm352_vm2, %v950_v13 }
  0x10   : > { %s1073_s13 = smov (!%p293_p5, %s934_s13), 1  ;;  %s1075_s12 = smov (!%p295_p6, %s930_s12), 7 }
  0x11   : > { %s800_s19 = sshll.u32 %s1073_s13, 4  ;;  %s799_s20 = sshll.u32 %s1075_s12, 1  ;;  %v454_v14 = vld [vmem:[#allocation2] sm:$0xff] }
  0x12   : > { %s302_s21 = sadd.s32 %s800_s19, %s799_s20  ;;  %v455_v17 = vld [vmem:[#allocation2 + $0x8] sm:$0xff]  ;;  %v487_v39 = vld [vmem:[#allocation3] sm:$0xff] }
  0x13   : > { %s1001_s22 = sshll.u32 %s302_s21, 3  ;;  %v503_v51 = vld [vmem:[#allocation4 + $0x8] sm:$0xff]  ;;  %v502_v53 = vld [vmem:[#allocation4] sm:$0xff] }
  0x14   : > { %s318_s25 = scalar_lea.vmem %s1059_s1, %s1001_s22  ;;  %s304_s28 = scalar_lea.vmem %s1058_s0, %s1001_s22  ;;  %v488_v42 = vld [vmem:[#allocation3 + $0x8] sm:$0xff] }
  0x15   : > { %v364_v0 = vld [vmem:[%s318_s25] sm:$0xff]  ;;  %v365_v1 = vld [vmem:[%s318_s25 + $0x8] sm:$0xff]  ;;  %s332_s4 = scalar_lea.vmem %s1060_s2, %s1001_s22  ;;  %s346_s7 = scalar_lea.vmem %s1061_s3, %s1001_s22 }
  0x16   : > { %v360_v2 = vld [vmem:[%s304_s28] sm:$0xff]  ;;  %v841_v3 = vpack.c.bf16 %v365_v1, %v364_v0  ;;  %v361_v5 = vld [vmem:[%s304_s28 + $0x8] sm:$0xff] }
  0x17   : > { %v362_v4 = vmul.f32 0.5, %v360_v2  ;;  %v363_v6 = vmul.f32 0.5, %v361_v5  ;;  %v516_v22 = vld [vmem:[%s332_s4] sm:$0xff]  ;;  %v517_v23 = vld [vmem:[%s332_s4 + $0x8] sm:$0xff] }
  0x18   : > { %843 = vmatprep.subr.msk.bf16.mxu0 %vm842_vm1, %v841_v3  ;;  %v847_v24 = vpack.c.bf16 %v517_v23, %v516_v22 }
  0x19   : > { %831 = vmatprep.mubr.msk.f32.mxu0 %vm357_vm0, %v362_v4  ;;  %846 = vmatpush3.bf16.xpose.msk.msra.mxu0 %vm842_vm1, %v841_v3 }
  0x1a   : > { %848 = vmatprep.subr.bf16.mxu1 %v847_v24 }
  0x1b   : > { %850 = vmatpush3.bf16.msra.mxu1 %v847_v24 }
  0x20   : > { %832 = vmatmul.mubr.msk.f32.vlgmr.msra.gmra.mrb[0].mxu0 %vm357_vm0, %v363_v6 }
  0xf3   : > { %v833_v8 = vpop.f32.mrb[0].mxu0 }
  0xf4   : > { %v445_v9 = vpop.f32.mrb[1].mxu0  ;;  %v460_v11 = vsel %vm456_vm3, %v833_v8, -inf }
  0xf5   : > { %v457_v10 = vsel %vm456_vm3, %v445_v9, -inf }
  0xf6   : > { %458 = vmax.xlane.f32.xlu0 %v457_v10 }
  0xfa   : > { %461 = vmax.xlane.f32.xlu0 %v460_v11 }
 0x183   : > { %v459_v15 = vpop.xlane.xlu0 %458 }
 0x184   : > { %v463_v16 = vmax.f32 %v454_v14, %v459_v15 }
 0x186   : > { %v465_v18 = vsub.f32 %v454_v14, %v463_v16  ;;  %603 = vst.msk [vmem:[#allocation2] sm:$0xff] %vm352_vm2, %v463_v16  ;;  %473 = vperm.xlu1 %894, %v463_v16  }
 0x187   : > { %v462_v19 = vpop.xlane.xlu0 %461 }
 0x188   : > { %v464_v20 = vmax.f32 %v455_v17, %v462_v19  ;;  %v467_v36 = vmul.f32 1.442695, %v465_v18 }
 0x18a   : > { %v466_v21 = vsub.f32 %v455_v17, %v464_v20  ;;  %604 = vst.msk [vmem:[#allocation2 + $0x8] sm:$0xff] %vm352_vm2, %v464_v20  ;;  %478 = vperm.xlu1 %894, %v464_v20  }
 0x18c   : > { %v469_v35 = vmul.f32 1.442695, %v466_v21 }
 0x205   : > { %v474_v25 = vpop.permute.xlu1 %473 }
 0x206   : > { %v481_v26 = vsub.f32 %v445_v9, %v474_v25 }
 0x208   : > { %v483_v27 = vmul.f32 1.442695, %v481_v26 }
 0x209   : > { %v479_v28 = vpop.permute.xlu1 %478 }
 0x20a   : > { %896 = vpow2.f32 %v483_v27  ;;  %v482_v29 = vsub.f32 %v833_v8, %v479_v28 }
 0x20c   : > { %v485_v30 = vmul.f32 1.442695, %v482_v29 }
 0x20e   : > { %898 = vpow2.f32 %v485_v30 }
 0x20f   : > { %900 = vpow2.f32 %v469_v35 }
 0x210   : > { %902 = vpow2.f32 %v467_v36 }
 0x214   : > { %v897_v31 = vpop.eup %896 }
 0x215   : > { %838 = vmatprep.mubr.msk.f32.mxu1 %vm456_vm3, %v897_v31  ;;  %v491_v32 = vsel %vm456_vm3, %v897_v31, 0.0 }
 0x216   : > { %492 = vadd.xlane.f32.xlu0 %v491_v32 }
 0x218   : > { %v899_v33 = vpop.eup %898 }
 0x219   : > { %839 = vmatmul.mubr.msk.f32.vlgmr.msra.gmra.mrb[0].mxu1 %vm456_vm3, %v899_v33  ;;  %v494_v34 = vsel %vm456_vm3, %v899_v33, 0.0  ;;  %v901_v37 = vpop.eup %900 }
 0x21a   : > { %495 = vadd.xlane.f32.xlu1 %v494_v34  ;;  %v903_v38 = vpop.eup %902  ;;  %v490_v44 = vmul.f32 %v901_v37, %v488_v42 }
 0x21b   : > { %v489_v40 = vmul.f32 %v903_v38, %v487_v39 }
 0x22b   : > { %511 = vperm.xlu1 %894, %v901_v37  }
 0x22c   : > { %506 = vperm.xlu0 %895, %v903_v38  }
 0x2a3   : > { %v493_v41 = vpop.xlane.xlu0 %492 }
 0x2a4   : > { %v497_v43 = vadd.f32 %v493_v41, %v489_v40 }
 0x2a6   : > { %500 = vst.msk [vmem:[#allocation3] sm:$0xff] %vm352_vm2, %v497_v43 }
 0x2a7   : > { %v496_v45 = vpop.xlane.xlu1 %495 }
 0x2a8   : > { %v498_v46 = vadd.f32 %v496_v45, %v490_v44 }
 0x2aa   : > { %501 = vst.msk [vmem:[#allocation3 + $0x8] sm:$0xff] %vm352_vm2, %v498_v46 }
 0x2ab   : > { %v512_v52 = vpop.permute.xlu1 %511  ;;  %v507_v54 = vpop.permute.xlu0 %506 }
 0x2ac   : > { %v515_v55 = vmul.f32 %v512_v52, %v503_v51  ;;  %v514_v56 = vmul.f32 %v507_v54, %v502_v53 }
 0x2ad   : > { %v608_v47 = vld [vmem:[#allocation3] sm:$0xff] }
 0x2ae   : > { %904 = vrcp.f32 %v608_v47 }
 0x2b1   : > { %v609_v48 = vld [vmem:[#allocation3 + $0x8] sm:$0xff] }
 0x2b2   : > { %906 = vrcp.f32 %v609_v48 }
 0x2b8   : > { %v905_v49 = vpop.eup %904 }
 0x2b9   : > { %616 = vperm.xlu0 %895, %v905_v49  }
 0x2bc   : > { %v907_v50 = vpop.eup %906 }
 0x2bd   : > { %621 = vperm.xlu0 %895, %v907_v50  }
 0x2ec   : > { %v840_v57 = vpop.f32.mrb[0].mxu1 }
 0x2ed   : > { %v600_v58 = vadd.f32 %v840_v57, %v515_v55  ;;  %v590_v59 = vpop.f32.mrb[1].mxu1 }
 0x2ee   : > { %v599_v60 = vadd.f32 %v590_v59, %v514_v56 }
 0x2ef   : > { %602 = vst.msk [vmem:[#allocation4 + $0x8] sm:$0xff] %vm357_vm0, %v600_v58 }
 0x2f0   : > { %601 = vst.msk [vmem:[#allocation4] sm:$0xff] %vm357_vm0, %v599_v60 }
 0x2f6   : > { %v613_v0 = vld [vmem:[#allocation4 + $0x8] sm:$0xff] }
 0x2f7   : > { %v612_v61 = vld [vmem:[#allocation4] sm:$0xff] }
 0x338   : > { %v617_v62 = vpop.permute.xlu0 %616 }
 0x339   : > { %v624_v63 = vmul.f32 %v617_v62, %v612_v61 }
 0x33b   : > { %626 = vst.msk [vmem:[%s346_s7] sm:$0xff] %vm357_vm0, %v624_v63 }
 0x33c   : > { %v622_v1 = vpop.permute.xlu0 %621 }
 0x33d   : > { %v625_v2 = vmul.f32 %v622_v1, %v613_v0 }
 0x33f   : > { %627 = vst.msk [vmem:[%s346_s7 + $0x8] sm:$0xff] %vm357_vm0, %v625_v2 }
 0x340 PF: > { %s13_s16 = sadd.s32 1, %s946_s16   ;;  %s1062_s12 = smov %s938_s14 }
 0x341   : > { %p10_p7 = scmp.ge.s32.totalorder %s13_s16, 18   ;;  %s1063_s13 = smov %s942_s15 }
 0x342   : > { %s1064_s14 = smov %s1067_s17  ;;  %s1065_s15 = smov %s1071_s18 }
 0x343   :  { %12 = sbr.rel (!%p10_p7) target bundleno = 3 (0x3), region = 76 }

// kernel: attention_forward.5
= control target key start
LH: loop header
LB: loop body
LE: loop exit
PB: predicated region body
PF: predicated region fallthrough
CT: control target
= control target key end

     0   :  { %s410_s0 = inlined_call_operand.vmem [shape: f32[32,128], index: 0, kind: input, shape index: {}]   ;;  %s411_s1 = inlined_call_operand.vmem [shape: f32[128,128], index: 1, kind: input, shape index: {}]   ;;  %s412_s2 = inlined_call_operand.vmem [shape: f32[1,128], index: 2, kind: input, shape index: {}]   ;;  %s413_s3 = inlined_call_operand.hbm [shape: f32[32,128], index: 3, kind: output, shape index: {}]  }
   0x1   :  { %v31_v0 = vld [vmem:[%s411_s1] sm:$0xff]  ;;  %v32_v1 = vld [vmem:[%s411_s1 + $0x8] sm:$0xff]  ;;  %v33_v2 = vld [vmem:[%s411_s1 + $0x10] sm:$0xff] }
   0x2   :  { %v237_v3 = vpack.c.bf16 %v32_v1, %v31_v0  ;;  %v34_v4 = vld [vmem:[%s411_s1 + $0x18] sm:$0xff]  ;;  %v35_v6 = vld [vmem:[%s411_s1 + $0x20] sm:$0xff]  ;;  %v36_v7 = vld [vmem:[%s411_s1 + $0x28] sm:$0xff] }
   0x3   :  { %v241_v5 = vpack.c.bf16 %v34_v4, %v33_v2  ;;  %v245_v8 = vpack.c.bf16 %v36_v7, %v35_v6  ;;  %v27_v9 = vld [vmem:[%s410_s0] sm:$0xff]  ;;  %v29_v10 = vld [vmem:[%s410_s0 + $0x10] sm:$0xff]  ;;  %v38_v12 = vld [vmem:[%s411_s1 + $0x38] sm:$0xff] }
   0x4   :  { %238 = vmatprep.subr.bf16.mxu0 %v237_v3  ;;  %269 = vmatprep.subr.bf16.mxu1 %v237_v3  ;;  %v37_v11 = vld [vmem:[%s411_s1 + $0x30] sm:$0xff] }
   0x5   :  { %240 = vmatpush3.bf16.msra.mxu0 %v237_v3  ;;  %277 = vmatpush3.bf16.msra.mxu1 %v237_v3 }
   0x6   :  { %242 = vmatprep.subr.bf16.mxu0 %v241_v5  ;;  %270 = vmatprep.subr.bf16.mxu1 %v241_v5 }
   0x7   :  { %231 = vmatprep.mubr.f32.mxu0 %v27_v9  ;;  %234 = vmatprep.mubr.f32.mxu1 %v29_v10 }
   0x8   :  { %8 = vsyncpa [#allocation4], 0  ;;  %v249_v13 = vpack.c.bf16 %v38_v12, %v37_v11  ;;  %v39_v14 = vld [vmem:[%s411_s1 + $0x40] sm:$0xff]  ;;  %v40_v15 = vld [vmem:[%s411_s1 + $0x48] sm:$0xff]  ;;  %s312_s26 = smov [#allocation3]  }
   0x9   :  { %244 = vmatpush3.bf16.msra.mxu0 %v241_v5  ;;  %278 = vmatpush3.bf16.msra.mxu1 %v241_v5  ;;  %v253_v16 = vpack.c.bf16 %v40_v15, %v39_v14  ;;  %v41_v17 = vld [vmem:[%s411_s1 + $0x50] sm:$0xff]  ;;  %v42_v18 = vld [vmem:[%s411_s1 + $0x58] sm:$0xff]  ;;  %v43_v20 = vld [vmem:[%s411_s1 + $0x60] sm:$0xff]  ;;  %s167_s27 = sshll.u32 %s312_s26, 4  ;;  %s168_s27 = int_to_ptr.vmem [resolvable:$true] %s167_s27 }
   0xa   :  { %246 = vmatprep.subr.bf16.mxu0 %v245_v8  ;;  %271 = vmatprep.subr.bf16.mxu1 %v245_v8  ;;  %v257_v19 = vpack.c.bf16 %v42_v18, %v41_v17  ;;  %v44_v21 = vld [vmem:[%s411_s1 + $0x68] sm:$0xff]  ;;  %v45_v23 = vld [vmem:[%s411_s1 + $0x70] sm:$0xff]  ;;  %v46_v24 = vld [vmem:[%s411_s1 + $0x78] sm:$0xff]  ;;  %p293_p1 = scmp.lt.s32.totalorder %s168_s27, %s168_s27 }
   0xb   :  { %v261_v22 = vpack.c.bf16 %v44_v21, %v43_v20  ;;  %v265_v25 = vpack.c.bf16 %v46_v24, %v45_v23  ;;  %v28_v26 = vld [vmem:[%s410_s0 + $0x8] sm:$0xff]  ;;  %v30_v27 = vld [vmem:[%s410_s0 + $0x18] sm:$0xff]  ;;  %v178_v28 = vld [vmem:[%s412_s2] ss:$0 sm:$0xff]  ;;  %s288_s0 = scalar_lea.vmem %s168_s27, 512 }
   0xc   :  { %p289_p0 = scmp.ne.s32.totalorder %s168_s27, %s288_s0  ;;  %p294_p2 = scmp.lt.s32.totalorder %s288_s0, %s288_s0 }
   0xd   :  { %248 = vmatpush3.bf16.msra.mxu0 %v245_v8  ;;  %279 = vmatpush3.bf16.msra.mxu1 %v245_v8 }
   0xe   :  { %250 = vmatprep.subr.bf16.mxu0 %v249_v13  ;;  %272 = vmatprep.subr.bf16.mxu1 %v249_v13  ;;  %p295_p3 = por %p294_p2, %p293_p1 }
  0x10   :  { %p296_p4 = pnand %p295_p3, %p289_p0 }
  0x11   :  { %252 = vmatpush3.bf16.msra.mxu0 %v249_v13  ;;  %280 = vmatpush3.bf16.msra.mxu1 %v249_v13 }
  0x12   :  { %254 = vmatprep.subr.bf16.mxu0 %v253_v16  ;;  %273 = vmatprep.subr.bf16.mxu1 %v253_v16 }
  0x15   :  { %256 = vmatpush3.bf16.msra.mxu0 %v253_v16  ;;  %281 = vmatpush3.bf16.msra.mxu1 %v253_v16 }
  0x16   :  { %258 = vmatprep.subr.bf16.mxu0 %v257_v19  ;;  %274 = vmatprep.subr.bf16.mxu1 %v257_v19 }
  0x19   :  { %260 = vmatpush3.bf16.msra.mxu0 %v257_v19  ;;  %282 = vmatpush3.bf16.msra.mxu1 %v257_v19 }
  0x1a   :  { %262 = vmatprep.subr.bf16.mxu0 %v261_v22  ;;  %275 = vmatprep.subr.bf16.mxu1 %v261_v22 }
  0x1d   :  { %264 = vmatpush3.bf16.msra.mxu0 %v261_v22  ;;  %283 = vmatpush3.bf16.msra.mxu1 %v261_v22 }
  0x1e   :  { %266 = vmatprep.subr.bf16.mxu0 %v265_v25  ;;  %276 = vmatprep.subr.bf16.mxu1 %v265_v25 }
  0x21   :  { %268 = vmatpush3.bf16.msra.mxu0 %v265_v25  ;;  %284 = vmatpush3.bf16.msra.mxu1 %v265_v25 }
  0x24   :  { %232 = vmatmul.mubr.f32.vlgmr.msra.gmra.mrb[0].mxu0 %v28_v26  ;;  %235 = vmatmul.mubr.f32.vlgmr.msra.gmra.mrb[0].mxu1 %v30_v27 }
  0xf7   :  { %v233_v29 = vpop.f32.mrb[0].mxu0  ;;  %v236_v30 = vpop.f32.mrb[0].mxu1 }
  0xf8   :  { %v155_v31 = vadd.f32 %v233_v29, %v178_v28  ;;  %v157_v32 = vadd.f32 %v236_v30, %v178_v28  ;;  %v113_v33 = vpop.f32.mrb[1].mxu0  ;;  %v123_v34 = vpop.f32.mrb[1].mxu1 }
  0xf9   :  { %v154_v35 = vadd.f32 %v178_v28, %v113_v33  ;;  %v156_v36 = vadd.f32 %v178_v28, %v123_v34 }
  0xfa   :  { %159 = vst [vmem:[#allocation3 + $0x8] sm:$0xff] %v155_v31  ;;  %161 = vst [vmem:[#allocation3 + $0x18] sm:$0xff] %v157_v32 }
  0xfb   :  { %158 = vst [vmem:[#allocation3] sm:$0xff] %v154_v35  ;;  %160 = vst [vmem:[#allocation3 + $0x10] sm:$0xff] %v156_v36 }
  0xfc   :  { %299 = shalt.err (!%p296_p4)
}
  0xfd   :  { %s300_s29 = scalar_lea.hbm %s413_s3, 512 }
  0xfe   :  { %p301_p5 = scmp.ne.s32.totalorder %s413_s3, %s300_s29  ;;  %p304_p6 = scmp.lt.u32.totalorder %s300_s29, %s413_s3 }
 0x100   :  { %p306_p7 = pnand %p304_p6, %p301_p5 }
 0x102   :  { %309 = shalt.err (!%p306_p7)
}
 0x103   :  { %s313_s7 = smov 128   ;;  %s314_s8 = smov 8  }
 0x104   :  { %173 = dma.vmem_to_hbm [thread:$0]  %s168_s27, 512, %s413_s3, [#allocation4], %s313_s7, %s313_s7, %s314_s8  }
 0x105   :  { %310 = dma.done.wait [#allocation4], 512  }
 0x106   :  { %311 = vsyncadd [#allocation4], 4294966784 }
 0x107   :  { %177 = vsyncpa [#allocation4], 1 }

</bundles_post_ra>
